<compile_context>
chip_gen: v5e
topology: v5e:2x2
jax: 0.10.0
libtpu: 0.0.40
codegen_flags: <defaults>
</compile_context>

<pallas_src>
import functools

import jax
import jax.numpy as jnp
from jax import lax
from jax.experimental import pallas as pl
from jax.experimental.pallas import tpu as pltpu

_LANES = 128


def _round_up(v, m):
    return (v + m - 1) // m * m


def _proxynca_kernel(x_ref, pt_ref, lbl_ref, out_ref, pos_ref, tot_ref, *,
                     two_scale_sq, nb_classes, batch, n_tile, c_tile):
    """One (batch tile, class tile) step of the ProxyNCA_classic loss.

    x_ref:   (n_tile, E_pad)   scale * normalize(X), MXU dtype
    pt_ref:  (E_pad, c_tile)   (2*scale) * normalize(P)^T, MXU dtype
    lbl_ref: (n_tile, 1)       int32 labels
    out_ref: (1, 128)          per-batch-tile partial loss sum (lane broadcast)
    pos_ref/tot_ref: (n_tile, 128) lane-dense running sums (f32 scratch)
    """
    i = pl.program_id(0)      # batch tile  ('parallel')
    j = pl.program_id(1)      # class tile  ('arbitrary', streaming reduction)

    # MXU: xp[r, c] = 2*scale^2 * <x_hat_r, p_hat_c>  (factor 2 folded into pt).
    xp = jnp.dot(x_ref[...], pt_ref[...], preferred_element_type=jnp.float32)

    # exp(-max(D, 0)) with D = 2*scale^2 - xp  ==  min(exp(xp - 2*scale^2), 1).
    e = jnp.minimum(jnp.exp(xp - two_scale_sq), 1.0)

    # Positive (label) column as a lane index local to this class tile; the
    # 128-lane iota is hoisted, only the tiny (n_tile, 1) label shifts per chunk.
    lbl_local = lbl_ref[...] - j * c_tile                        # (n_tile, 1)
    lane = lax.broadcasted_iota(jnp.int32, (n_tile, _LANES), 1)

    # Lane-dense accumulation: VALU adds over static 128-lane slices of e; the
    # cross-lane (XLU) reduce is deferred to the once-per-batch-tile finalize.
    e0 = e[:, 0:_LANES]
    tot_step = e0
    pos_step = jnp.where(lane == lbl_local, e0, 0.0)
    for k in range(1, c_tile // _LANES):
        e_k = e[:, k * _LANES:(k + 1) * _LANES]
        tot_step = tot_step + e_k
        pos_step = pos_step + jnp.where(lane == (lbl_local - k * _LANES), e_k, 0.0)

    @pl.when(j == 0)
    def _first():
        pos_ref[...] = pos_step
        tot_ref[...] = tot_step

    @pl.when(j > 0)
    def _accumulate():
        pos_ref[...] += pos_step
        tot_ref[...] += tot_step

    @pl.when(j == pl.num_programs(1) - 1)
    def _finalize():
        # Zero-padded proxy columns live only in this (last) class tile; remove
        # their contribution exactly from this tile's own e.
        col = lax.broadcasted_iota(jnp.int32, e.shape, 1)
        pad_e = jnp.where(col >= nb_classes - j * c_tile, e, 0.0)
        pos = jnp.sum(pos_ref[...], axis=-1, keepdims=True)          # (n_tile, 1)
        tot = (jnp.sum(tot_ref[...], axis=-1, keepdims=True)
               - jnp.sum(pad_e, axis=-1, keepdims=True))
        neg = tot - pos
        # -log(loss1 / loss2) == log(loss2) - log(loss1): no divide.
        per_sample = jnp.log(neg) - jnp.log(pos)
        # Mask batch-padding rows, then emit one lane-dense (1, 128) partial sum.
        row = lax.broadcasted_iota(jnp.int32, (n_tile, 1), 0) + i * n_tile
        per_sample = jnp.where(row < batch, per_sample, 0.0)
        tile_sum = jnp.sum(per_sample, axis=0, keepdims=True)        # (1, 1)
        out_ref[...] = jnp.broadcast_to(tile_sum, out_ref.shape)


def proxynca_classic_loss(x, proxies, labels, *, scale,
                          use_bf16_matmul=True,
                          batch_tile=256, class_tile=2048,
                          max_class_tile=None,
                          vmem_budget_bytes=40 * 1024 * 1024):
    """JAX wrapper reproducing ProxyNCA_classic.forward(X, T) (returns mean loss)."""
    n, e = x.shape
    c, e2 = proxies.shape
    assert e == e2

    scale = float(scale)
    two_scale_sq = 2.0 * scale * scale
    mxu_dtype = jnp.bfloat16 if use_bf16_matmul else jnp.float32
    itemsize = 2 if use_bf16_matmul else 4

    # --- hoisted preprocessing (once per call, negligible vs the main matmul).
    # X carries `scale`, proxies carry `2*scale`, so the in-kernel distance is
    # D = 2*scale^2 - X@P^T and the x2/negation work disappears from the hot loop.
    eps2 = 1e-24   # matches the reference's eps=1e-12 clamp on the norm
    xf = x.astype(jnp.float32)
    x_n = xf * (scale * lax.rsqrt(
        jnp.maximum(jnp.sum(xf * xf, axis=-1, keepdims=True), eps2)))
    pf = proxies.astype(jnp.float32)
    p_n = pf * ((2.0 * scale) * lax.rsqrt(
        jnp.maximum(jnp.sum(pf * pf, axis=-1, keepdims=True), eps2)))

    # --- tiling ---
    e_pad = _round_up(e, 16 if use_bf16_matmul else 8)   # contraction / sublane axis

    # Batch tile: split into >=2 tiles when there is enough work so the
    # 'parallel' axis spans both TensorCores on v7x (harmless on v5e/v6e).
    n_pad8 = _round_up(n, 8)
    if n_pad8 <= 8:
        n_tile = n_pad8
    else:
        n_tile = min(_round_up(batch_tile, 8), _round_up(pl.cdiv(n_pad8, 2), 8))
    n_pad = _round_up(n_pad8, n_tile)

    def vmem_estimate(ct):
        return (2 * n_tile * e_pad * itemsize       # X blocks (double-buffered)
                + 2 * e_pad * ct * itemsize         # proxies^T blocks
                + 2 * n_tile * 4                    # label blocks
                + 2 * n_tile * _LANES * 4           # pos / tot accumulators
                + 3 * n_tile * ct * 4)              # xp / e / mask f32 temporaries

    # Class tile: keep the whole (padded) proxy slab VMEM-resident when the
    # conservative budget allows (safe on v7x's 64 MiB per TC, ample headroom
    # on 128 MiB v5e/v6e), otherwise stream class tiles of `class_tile`.
    c_pad128 = _round_up(c, _LANES)
    if vmem_estimate(c_pad128) <= vmem_budget_bytes:
        c_tile = c_pad128
    else:
        c_tile = min(_round_up(class_tile, _LANES), c_pad128)
        while c_tile > _LANES and vmem_estimate(c_tile) > vmem_budget_bytes:
            c_tile = _round_up(c_tile // 2, _LANES)
    if max_class_tile is not None:
        c_tile = min(c_tile, _round_up(max_class_tile, _LANES))
    c_pad = _round_up(c, c_tile)

    grid = (n_pad // n_tile, c_pad // c_tile)

    # --- padded operands (zero pads never perturb the dot; padded classes are
    # removed exactly in the kernel finalize, padded batch rows are masked) ---
    x_p = jnp.zeros((n_pad, e_pad), mxu_dtype).at[:n, :e].set(x_n.astype(mxu_dtype))
    p_t = jnp.zeros((e_pad, c_pad), mxu_dtype).at[:e, :c].set(p_n.T.astype(mxu_dtype))
    lbl = jnp.zeros((n_pad, 1), jnp.int32).at[:n, 0].set(labels.astype(jnp.int32))

    kernel = functools.partial(
        _proxynca_kernel, two_scale_sq=two_scale_sq, nb_classes=c,
        batch=n, n_tile=n_tile, c_tile=c_tile)

    vmem_limit = int(min(max(vmem_estimate(c_tile) + (8 << 20), 32 << 20), 48 << 20))

    partial_sums = pl.pallas_call(
        kernel,
        out_shape=jax.ShapeDtypeStruct((1, _LANES * grid[0]), jnp.float32),
        grid=grid,
        in_specs=[
            pl.BlockSpec((n_tile, e_pad), lambda i, j: (i, 0)),    # X (normalized)
            pl.BlockSpec((e_pad, c_tile), lambda i, j: (0, j)),    # proxies^T
            pl.BlockSpec((n_tile, 1), lambda i, j: (i, 0)),        # labels
        ],
        out_specs=pl.BlockSpec((1, _LANES), lambda i, j: (0, i)),
        scratch_shapes=[
            pltpu.VMEM((n_tile, _LANES), jnp.float32),   # running positive sum
            pltpu.VMEM((n_tile, _LANES), jnp.float32),   # running total sum
        ],
        compiler_params=pltpu.CompilerParams(
            dimension_semantics=("parallel", "arbitrary"),
            vmem_limit_bytes=vmem_limit,
        ),
    )(x_p, p_t, lbl)

    tile_sums = partial_sums.reshape(grid[0], _LANES)[:, 0]
    return jnp.sum(tile_sums) / n


def reference_loss(x, proxies, labels, *, scale):
    """Independent pure-JAX reference of the PyTorch forward (for checking)."""
    eps = 1e-12
    xs = scale * x / jnp.maximum(jnp.linalg.norm(x, axis=-1, keepdims=True), eps)
    ps = scale * proxies / jnp.maximum(
        jnp.linalg.norm(proxies, axis=-1, keepdims=True), eps)
    d = (jnp.sum(xs * xs, -1, keepdims=True)
         + jnp.sum(ps * ps, -1)[None, :]
         - 2.0 * xs @ ps.T)
    d = jnp.maximum(d, 0.0)
    t = jax.nn.one_hot(labels, proxies.shape[0], dtype=jnp.float32)
    e = jnp.exp(-d)
    loss1 = jnp.sum(t * e, -1)
    loss2 = jnp.sum((1.0 - t) * e, -1)
    return jnp.mean(-jnp.log(loss1 / loss2))


if __name__ == "__main__":
    scale = 3.0

    # --- Config A: tiny shapes matching the module (single tile each way) ---
    nb_classes, sz_embed, batch = 16, 32, 8
    k_prox, k_x, k_t = jax.random.split(jax.random.PRNGKey(0), 3)
    # Deterministic parameter init mirroring torch.randn(nb_classes, sz_embed)/8
    proxies = jax.random.normal(k_prox, (nb_classes, sz_embed), jnp.float32) / 8.0
    x = jax.random.normal(k_x, (batch, sz_embed), jnp.float32)
    labels = jax.random.randint(k_t, (batch,), 0, nb_classes, dtype=jnp.int32)

    ref = reference_loss(x, proxies, labels, scale=scale)

    loss_f32 = jax.block_until_ready(
        proxynca_classic_loss(x, proxies, labels, scale=scale,
                              use_bf16_matmul=False))
    assert jnp.isfinite(loss_f32), "f32 loss is not finite"
    assert jnp.allclose(loss_f32, ref, rtol=5e-3, atol=5e-3), (loss_f32, ref)

    loss_bf16 = jax.block_until_ready(
        proxynca_classic_loss(x, proxies, labels, scale=scale,
                              use_bf16_matmul=True))
    assert jnp.isfinite(loss_bf16), "bf16 loss is not finite"
    assert jnp.allclose(loss_bf16, ref, rtol=1e-1, atol=1e-1), (loss_bf16, ref)

    # --- Config B: ragged shapes exercising batch padding, class padding and
    # multiple batch / class tiles (max_class_tile forces the streaming path) --
    nb_classes, sz_embed, batch = 300, 24, 20
    k_prox, k_x, k_t = jax.random.split(jax.random.PRNGKey(1), 3)
    proxies = jax.random.normal(k_prox, (nb_classes, sz_embed), jnp.float32) / 8.0
    x = jax.random.normal(k_x, (batch, sz_embed), jnp.float32)
    labels = jax.random.randint(k_t, (batch,), 0, nb_classes, dtype=jnp.int32)

    ref_b = reference_loss(x, proxies, labels, scale=scale)
    loss_tiled = jax.block_until_ready(
        proxynca_classic_loss(x, proxies, labels, scale=scale,
                              use_bf16_matmul=False, max_class_tile=128))
    assert jnp.isfinite(loss_tiled), "tiled loss is not finite"
    assert jnp.allclose(loss_tiled, ref_b, rtol=5e-3, atol=5e-3), (loss_tiled, ref_b)

    print("KERNEL_OK")
</pallas_src>

<mosaic_0001>
module attributes {stable_mosaic.version = 11 : i64} {
  func.func @_proxynca_kernel(%arg0: i32, %arg1: i32, %arg2: memref<8x32xf32, #tpu.memory_space<vmem>>, %arg3: memref<32x128xf32, #tpu.memory_space<vmem>>, %arg4: memref<8x1xi32, #tpu.memory_space<vmem>>, %arg5: memref<1x128xf32, #tpu.memory_space<vmem>>, %arg6: memref<8x128xf32, #tpu.memory_space<vmem>>, %arg7: memref<8x128xf32, #tpu.memory_space<vmem>>) attributes {dimension_semantics = [#tpu.dimension_semantics<parallel>, #tpu.dimension_semantics<arbitrary>], iteration_bounds = array<i64: 1, 1>, scalar_prefetch = 0 : i64, scratch_operands = 2 : i64, tpu.core_type = #tpu.core_type<tc>, window_params = [{transform_indices = @transform_0, window_bounds = array<i64: 8, 32>}, {transform_indices = @transform_1, window_bounds = array<i64: 32, 128>}, {transform_indices = @transform_2, window_bounds = array<i64: 8, 1>}, {transform_indices = @transform_3, window_bounds = array<i64: 1, 128>}]} {
    %c0 = arith.constant 0 : index
    %c0_0 = arith.constant 0 : index
    %0 = vector.load %arg2[%c0, %c0_0] : memref<8x32xf32, #tpu.memory_space<vmem>>, vector<8x32xf32>
    %c0_1 = arith.constant 0 : index
    %c0_2 = arith.constant 0 : index
    %1 = vector.load %arg3[%c0_1, %c0_2] : memref<32x128xf32, #tpu.memory_space<vmem>>, vector<32x128xf32>
    %cst = arith.constant dense<0.000000e+00> : vector<8x128xf32>
    %2 = tpu.matmul %0, %1, %cst {dimension_numbers = #tpu.dot_dimension_numbers<[1], [0], [0], [1], [0, 0, 1, 1], [], []>} : vector<8x32xf32>, vector<32x128xf32>, vector<8x128xf32> -> vector<8x128xf32>
    %cst_3 = arith.constant 1.800000e+01 : f32
    %3 = vector.broadcast %cst_3 : f32 to vector<8x128xf32>
    %4 = arith.subf %2, %3 : vector<8x128xf32>
    %5 = math.exp %4 : vector<8x128xf32>
    %cst_4 = arith.constant 1.000000e+00 : f32
    %6 = vector.broadcast %cst_4 : f32 to vector<8x128xf32>
    %7 = arith.minimumf %5, %6 : vector<8x128xf32>
    %c0_5 = arith.constant 0 : index
    %c0_6 = arith.constant 0 : index
    %8 = vector.load %arg4[%c0_5, %c0_6] : memref<8x1xi32, #tpu.memory_space<vmem>>, vector<8x1xi32>
    %c128_i32 = arith.constant 128 : i32
    %9 = arith.muli %arg1, %c128_i32 : i32
    %10 = vector.broadcast %9 : i32 to vector<8x1xi32>
    %11 = arith.subi %8, %10 : vector<8x1xi32>
    %12 = tpu.iota {dimensions = array<i32: 1>} : vector<8x128xi32>
    %13 = vector.broadcast %11 : vector<8x1xi32> to vector<8x128xi32>
    %14 = arith.cmpi eq, %12, %13 : vector<8x128xi32>
    %cst_7 = arith.constant 0.000000e+00 : f32
    %15 = vector.broadcast %cst_7 : f32 to vector<8x128xf32>
    %16 = arith.select %14, %7, %15 : vector<8x128xi1>, vector<8x128xf32>
    %c0_i32 = arith.constant 0 : i32
    %17 = arith.cmpi eq, %arg1, %c0_i32 : i32
    %18 = arith.extui %17 : i1 to i32
    %c0_i32_8 = arith.constant 0 : i32
    %19 = arith.cmpi ne, %18, %c0_i32_8 : i32
    scf.if %19 {
      %c0_13 = arith.constant 0 : index
      %c0_14 = arith.constant 0 : index
      %26 = vector.load %arg6[%c0_13, %c0_14] : memref<8x128xf32, #tpu.memory_space<vmem>>, vector<8x128xf32>
      tpu.vector_store %arg6[%c0_13, %c0_14], %16 {strides = array<i32>} : memref<8x128xf32, #tpu.memory_space<vmem>>, vector<8x128xf32>,
      %c0_15 = arith.constant 0 : index
      %c0_16 = arith.constant 0 : index
      %27 = vector.load %arg7[%c0_15, %c0_16] : memref<8x128xf32, #tpu.memory_space<vmem>>, vector<8x128xf32>
      tpu.vector_store %arg7[%c0_15, %c0_16], %7 {strides = array<i32>} : memref<8x128xf32, #tpu.memory_space<vmem>>, vector<8x128xf32>,
    } else {
    }
    %c0_i32_9 = arith.constant 0 : i32
    %20 = arith.cmpi sgt, %arg1, %c0_i32_9 : i32
    %21 = arith.extui %20 : i1 to i32
    %c0_i32_10 = arith.constant 0 : i32
    %22 = arith.cmpi ne, %21, %c0_i32_10 : i32
    scf.if %22 {
      %c0_13 = arith.constant 0 : index
      %c0_14 = arith.constant 0 : index
      %26 = vector.load %arg6[%c0_13, %c0_14] : memref<8x128xf32, #tpu.memory_space<vmem>>, vector<8x128xf32>
      %27 = arith.addf %26, %16 : vector<8x128xf32>
      %c0_15 = arith.constant 0 : index
      %c0_16 = arith.constant 0 : index
      %28 = vector.load %arg6[%c0_15, %c0_16] : memref<8x128xf32, #tpu.memory_space<vmem>>, vector<8x128xf32>
      tpu.vector_store %arg6[%c0_15, %c0_16], %27 {strides = array<i32>} : memref<8x128xf32, #tpu.memory_space<vmem>>, vector<8x128xf32>,
      %c0_17 = arith.constant 0 : index
      %c0_18 = arith.constant 0 : index
      %29 = vector.load %arg7[%c0_17, %c0_18] : memref<8x128xf32, #tpu.memory_space<vmem>>, vector<8x128xf32>
      %30 = arith.addf %29, %7 : vector<8x128xf32>
      %c0_19 = arith.constant 0 : index
      %c0_20 = arith.constant 0 : index
      %31 = vector.load %arg7[%c0_19, %c0_20] : memref<8x128xf32, #tpu.memory_space<vmem>>, vector<8x128xf32>
      tpu.vector_store %arg7[%c0_19, %c0_20], %30 {strides = array<i32>} : memref<8x128xf32, #tpu.memory_space<vmem>>, vector<8x128xf32>,
    } else {
    }
    %c0_i32_11 = arith.constant 0 : i32
    %23 = arith.cmpi eq, %arg1, %c0_i32_11 : i32
    %24 = arith.extui %23 : i1 to i32
    %c0_i32_12 = arith.constant 0 : i32
    %25 = arith.cmpi ne, %24, %c0_i32_12 : i32
    scf.if %25 {
      %26 = tpu.iota {dimensions = array<i32: 1>} : vector<8x128xi32>
      %c128_i32_13 = arith.constant 128 : i32
      %27 = arith.muli %arg1, %c128_i32_13 : i32
      %c16_i32 = arith.constant 16 : i32
      %28 = arith.subi %c16_i32, %27 : i32
      %29 = vector.broadcast %28 : i32 to vector<8x128xi32>
      %30 = arith.cmpi sge, %26, %29 : vector<8x128xi32>
      %cst_14 = arith.constant 0.000000e+00 : f32
      %31 = vector.broadcast %cst_14 : f32 to vector<8x128xf32>
      %32 = arith.select %30, %7, %31 : vector<8x128xi1>, vector<8x128xf32>
      %c0_15 = arith.constant 0 : index
      %c0_16 = arith.constant 0 : index
      %33 = vector.load %arg6[%c0_15, %c0_16] : memref<8x128xf32, #tpu.memory_space<vmem>>, vector<8x128xf32>
      %cst_17 = arith.constant dense<0.000000e+00> : vector<8xf32>
      %34 = vector.multi_reduction <add>, %33, %cst_17 [1] : vector<8x128xf32> to vector<8xf32>
      %35 = vector.shape_cast %34 : vector<8xf32> to vector<8x1xf32>
      %c0_18 = arith.constant 0 : index
      %c0_19 = arith.constant 0 : index
      %36 = vector.load %arg7[%c0_18, %c0_19] : memref<8x128xf32, #tpu.memory_space<vmem>>, vector<8x128xf32>
      %cst_20 = arith.constant dense<0.000000e+00> : vector<8xf32>
      %37 = vector.multi_reduction <add>, %36, %cst_20 [1] : vector<8x128xf32> to vector<8xf32>
      %38 = vector.shape_cast %37 : vector<8xf32> to vector<8x1xf32>
      %cst_21 = arith.constant dense<0.000000e+00> : vector<8xf32>
      %39 = vector.multi_reduction <add>, %32, %cst_21 [1] : vector<8x128xf32> to vector<8xf32>
      %40 = vector.shape_cast %39 : vector<8xf32> to vector<8x1xf32>
      %41 = arith.subf %38, %40 : vector<8x1xf32>
      %42 = arith.subf %41, %35 : vector<8x1xf32>
      %43 = math.log %42 : vector<8x1xf32>
      %44 = math.log %35 : vector<8x1xf32>
      %45 = arith.subf %43, %44 : vector<8x1xf32>
      %46 = tpu.iota {dimensions = array<i32: 0>} : vector<8x1xi32>
      %c8_i32 = arith.constant 8 : i32
      %47 = arith.muli %arg0, %c8_i32 : i32
      %48 = vector.broadcast %47 : i32 to vector<8x1xi32>
      %49 = arith.addi %46, %48 : vector<8x1xi32>
      %c8_i32_22 = arith.constant 8 : i32
      %50 = vector.broadcast %c8_i32_22 : i32 to vector<8x1xi32>
      %51 = arith.cmpi slt, %49, %50 : vector<8x1xi32>
      %cst_23 = arith.constant 0.000000e+00 : f32
      %52 = vector.broadcast %cst_23 : f32 to vector<8x1xf32>
      %53 = arith.select %51, %45, %52 : vector<8x1xi1>, vector<8x1xf32>
      %cst_24 = arith.constant dense<0.000000e+00> : vector<1xf32>
      %54 = vector.multi_reduction <add>, %53, %cst_24 [0] : vector<8x1xf32> to vector<1xf32>
      %55 = vector.shape_cast %54 : vector<1xf32> to vector<1x1xf32>
      %56 = vector.shape_cast %55 : vector<1x1xf32> to vector<1x1xf32>
      %57 = vector.broadcast %56 : vector<1x1xf32> to vector<1x128xf32>
      %c0_25 = arith.constant 0 : index
      %c0_26 = arith.constant 0 : index
      %58 = vector.load %arg5[%c0_25, %c0_26] : memref<1x128xf32, #tpu.memory_space<vmem>>, vector<1x128xf32>
      tpu.vector_store %arg5[%c0_25, %c0_26], %57 {strides = array<i32>} : memref<1x128xf32, #tpu.memory_space<vmem>>, vector<1x128xf32>,
    } else {
    }
    return
  }
  func.func @transform_0(%arg0: i32, %arg1: i32) -> (i32, i32) {
    %c0_i32 = arith.constant 0 : i32
    %c0_i32_0 = arith.constant 0 : i32
    return %arg0, %c0_i32 : i32, i32
  }
  func.func @transform_1(%arg0: i32, %arg1: i32) -> (i32, i32) {
    %c0_i32 = arith.constant 0 : i32
    %c0_i32_0 = arith.constant 0 : i32
    return %c0_i32, %arg1 : i32, i32
  }
  func.func @transform_2(%arg0: i32, %arg1: i32) -> (i32, i32) {
    %c0_i32 = arith.constant 0 : i32
    %c0_i32_0 = arith.constant 0 : i32
    return %arg0, %c0_i32 : i32, i32
  }
  func.func @transform_3(%arg0: i32, %arg1: i32) -> (i32, i32) {
    %c0_i32 = arith.constant 0 : i32
    %c0_i32_0 = arith.constant 0 : i32
    return %c0_i32, %arg0 : i32, i32
  }
}

</mosaic_0001>

<bundles_post_ra>
// kernel: tpu_custom_call.1
= control target key start
LH: loop header
LB: loop body
LE: loop exit
PB: predicated region body
PF: predicated region fallthrough
CT: control target
= control target key end

     0   :  { %8 = vsyncpa [#allocation5], 0  ;;  %s247_s0 = inlined_call_operand.vmem [shape: f32[8,32], index: 0, kind: input, shape index: {}]   ;;  %s248_s1 = inlined_call_operand.hbm [shape: f32[32,128], index: 1, kind: input, shape index: {}]   ;;  %s249_s2 = inlined_call_operand.vmem [shape: s32[8,1], index: 2, kind: input, shape index: {}]   ;;  %s250_s3 = inlined_call_operand.hbm [shape: f32[1,128], index: 3, kind: output, shape index: {}]  }
   0x1   :  { %9 = vsyncpa [#allocation6], 0  ;;  %s16_s14 = sshll.u32 %s248_s1, 4  ;;  %s210_s15 = smov [#allocation4]   ;;  %s17_s14 = int_to_ptr.hbm [resolvable:$true] %s16_s14 }
   0x2   :  { %s18_s16 = sshll.u32 %s210_s15, 4  ;;  %s211_s17 = smov 128   ;;  %s19_s16 = int_to_ptr.vmem [resolvable:$true] %s18_s16 }
   0x3   :  { %s212_s18 = smov 8  }
   0x4   :  { %24 = dma.hbm_to_vmem [thread:$0]  %s17_s14, 512, %s19_s16, [#allocation5], %s211_s17, %s211_s17, %s212_s18  }
   0x5   :  { %206 = dma.done.wait [#allocation5], 512  }
   0x6   :  { %207 = vsyncadd [#allocation5], 4294966784  ;;  %v213_v0 = vmov 0   ;;  %v35_v1 = vld [vmem:[#allocation4 + $0x18] sm:$0xff]  ;;  %v34_v2 = vld [vmem:[#allocation4 + $0x10] sm:$0xff]  ;;  %vm36_vm0 = vcmask 261120   ;;  %v68_v10 = vlaneseq }
   0x7   :  { %151 = vset.pattern.permute.xlu0 %v213_v0  ;;  %52 = vmatpush.msra.mxu0 %v35_v1  ;;  %v64_v3 = vld [vmem:[%s249_s2] sm:$0xff]  ;;  %v33_v4 = vld [vmem:[#allocation4 + $0x8] sm:$0xff]  ;;  %s134_s24 = sshll.u32 %s250_s3, 4  ;;  %s135_s24 = int_to_ptr.hbm [resolvable:$true] %s134_s24 }
   0x8   :  { %71 = vperm.xlu0 %151, %v64_v3   ;;  %v32_v5 = vld [vmem:[#allocation4] sm:$0xff]  ;;  %v69_v11 = vand.u32 127, %v68_v10 }
   0x9   :  { %53 = vmatpush.msra.mxu0 %v34_v2  ;;  %v31_v6 = vld [vmem:[%s247_s0] sm:$0xff]  ;;  %s214_s0 = smov [#allocation7]  }
   0xa   :  { %vm96_vm1 = vcmp.ge.s32.totalorder %v69_v11, 16  ;;  %s132_s2 = sshll.u32 %s214_s0, 4  ;;  %s133_s2 = int_to_ptr.vmem [resolvable:$true] %s132_s2 }
   0xb   :  { %54 = vmatpush.msra.mxu0 %v33_v4 }
   0xd   :  { %55 = vmatpush.msra.mxu0 %v32_v5 }
   0xe   :  { %144 = vmatmul.msk.f32.vlgmr.msra.gmra.mxu0 %vm36_vm0, %v31_v6 }
  0x7a   :  { %v72_v15 = vpop.permute.xlu0 %71 }
  0x7b   :  { %vm73_vm2 = vcmp.eq.s32.totalorder %v69_v11, %v72_v15 }
  0x8b   :  { %v57_v7 = vpop.f32.mrf.mxu0 }
  0x8c   :  { %v145_v8 = vadd.f32 -18.0, %v57_v7 }
  0x8e   :  { %v61_v9 = vmul.f32 1.442695, %v145_v8 }
  0x90   :  { %152 = vpow2.f32 %v61_v9 }
  0x96   :  { %v153_v12 = vpop.eup %152 }
  0x97   :  { %v63_v13 = vmin.f32 %v153_v12, 1.0 }
  0x99   :  { %102 = vadd.xlane.f32.xlu0 %v63_v13  ;;  %v97_v14 = vsel %vm96_vm1, %v63_v13, 0.0  ;;  %v74_v16 = vsel %vm73_vm2, %v63_v13, 0.0 }
  0x9a   :  { %104 = vadd.xlane.f32.xlu1 %v97_v14 }
  0xa2   :  { %99 = vadd.xlane.f32.xlu1 %v74_v16 }
 0x10c   :  { %v103_v18 = vpop.xlane.xlu0 %102 }
 0x10d   :  { %v105_v17 = vpop.xlane.xlu1 %104 }
 0x10e   :  { %v106_v19 = vsub.f32 %v103_v18, %v105_v17 }
 0x115   :  { %v100_v20 = vpop.xlane.xlu1 %99 }
 0x116   :  { %v107_v21 = vsub.f32 %v106_v19, %v100_v20  ;;  %154 = vlog2.f32 %v100_v20 }
 0x118   :  { %156 = vlog2.f32 %v107_v21 }
 0x11c   :  { %v155_v22 = vpop.eup %154 }
 0x11d   :  { %v111_v25 = vmul.f32 0.6931472, %v155_v22 }
 0x11e   :  { %v157_v23 = vpop.eup %156 }
 0x11f   :  { %v109_v24 = vmul.f32 0.6931472, %v157_v23 }
 0x121   :  { %v112_v26 = vsub.f32 %v109_v24, %v111_v25 }
 0x123   :  { %v120_v27 = vrot.slane %v112_v26, 4 }
 0x125   :  { %v121_v28 = vadd.f32 %v120_v27, %v112_v26 }
 0x127   :  { %v122_v29 = vrot.slane %v121_v28, 2 }
 0x129   :  { %v123_v30 = vadd.f32 %v122_v29, %v121_v28 }
 0x12b   :  { %v124_v31 = vrot.slane %v123_v30, 1 }
 0x12d   :  { %v125_v32 = vadd.f32 %v124_v31, %v123_v30 }
 0x12f   :  { %126 = vst [vmem:[#allocation7] sm:$0x1] %v125_v32 }
 0x130   :  { %137 = dma.vmem_to_hbm [thread:$0]  %s133_s2, 16, %s135_s24, [#allocation6]  }
 0x131   :  { %208 = dma.done.wait [#allocation6], 16  }
 0x132   :  { %209 = vsyncadd [#allocation6], 4294967280 }
 0x133   :  { %142 = vsyncpa [#allocation5], 1 }
 0x134   :  { %143 = vsyncpa [#allocation6], 1 }

</bundles_post_ra>
